<compile_context>
chip_gen: v6e
topology: v6e:2x2x1
jax: 0.10.0
libtpu: 0.0.40
codegen_flags: <defaults>
</compile_context>

<pallas_src>
import functools

import jax
import jax.numpy as jnp
from jax.experimental import pallas as pl
from jax.experimental.pallas import tpu as pltpu


def mlp_kernel(x_ref, w1_ref, b1_ref, w2_ref, b2_ref, o_ref):
    # Layer 1: bf16 MXU operands, f32 accumulation; bias add + tanh in f32
    # (tanh goes to the EUP slot, overlapping MXU/VPU work).
    xb = x_ref[...].astype(jnp.bfloat16)
    w1 = w1_ref[...].astype(jnp.bfloat16)
    h = jnp.dot(xb, w1, preferred_element_type=jnp.float32)
    h = jnp.tanh(h + b1_ref[...])                 # b1 is (1, n_hidden) -> broadcasts
    # Layer 2: same recipe; store the true-width (unpadded) output tile.
    w2 = w2_ref[...].astype(jnp.bfloat16)
    y = jnp.dot(h.astype(jnp.bfloat16), w2, preferred_element_type=jnp.float32)
    o_ref[...] = (y + b2_ref[...]).astype(o_ref.dtype)


def _round_up(x, m):
    return ((x + m - 1) // m) * m


def _resident_spec(block_shape, single_buffer):
    # Weights/biases have a constant index_map -> resident across the grid.
    # Single-buffer them when this Pallas build supports pipeline_mode.
    if single_buffer and hasattr(pl, "Buffered"):
        return pl.BlockSpec(block_shape, lambda i: (0, 0),
                            pipeline_mode=pl.Buffered(1))
    return pl.BlockSpec(block_shape, lambda i: (0, 0))


@functools.partial(jax.jit, static_argnames=("batch_tile", "single_buffer_weights"))
def net_forward(x, w1_t, b1, w2_t, b2, *, batch_tile=None, single_buffer_weights=True):
    """x: (B, n_input) f32; w1_t: (n_input, n_hidden) [bf16 or f32];
       b1: (1, n_hidden) f32; w2_t: (n_hidden, n_output); b2: (1, n_output) f32."""
    B, n_in = x.shape
    n_hid = w1_t.shape[1]
    n_out = w2_t.shape[1]

    if batch_tile is None:
        # Keep >= 2 grid steps whenever the batch is big enough so v7x's two
        # TensorCores both get work via dimension_semantics=("parallel",);
        # cap the tile at 512 rows (re-derived for v7x's 64 MiB VMEM).
        batch_tile = min(512, _round_up(max(B // 2, 8), 8))

    # Pad the batch to a multiple of the tile instead of hard-failing; the
    # padded rows are sliced off below.
    B_pad = _round_up(B, batch_tile)
    if B_pad != B:
        x = jnp.pad(x, ((0, B_pad - B), (0, 0)))
    grid = (B_pad // batch_tile,)

    # Explicit VMEM budget: double-buffered x/out tiles + resident weights,
    # with generous margin, clamped to [16 MiB, 32 MiB] (safe on all chips).
    x_tile_bytes = batch_tile * n_in * x.dtype.itemsize
    out_tile_bytes = batch_tile * n_out * 4
    w_bytes = (w1_t.size * w1_t.dtype.itemsize + w2_t.size * w2_t.dtype.itemsize
               + b1.size * b1.dtype.itemsize + b2.size * b2.dtype.itemsize)
    est = 2 * x_tile_bytes + 2 * out_tile_bytes + 2 * w_bytes
    vmem_limit = min(max(4 * est + (2 << 20), 16 << 20), 32 << 20)

    cost = pl.CostEstimate(
        flops=2 * B_pad * (n_in * n_hid + n_hid * n_out),
        transcendentals=B_pad * n_hid,
        bytes_accessed=(B_pad * n_in * x.dtype.itemsize + w_bytes
                        + B_pad * n_out * 4),
    )

    out = pl.pallas_call(
        mlp_kernel,
        out_shape=jax.ShapeDtypeStruct((B_pad, n_out), jnp.float32),
        grid_spec=pl.GridSpec(
            grid=grid,
            in_specs=[
                pl.BlockSpec((batch_tile, n_in), lambda i: (i, 0)),      # x tile
                _resident_spec((n_in, n_hid), single_buffer_weights),    # W1^T
                _resident_spec((1, n_hid), single_buffer_weights),       # b1
                _resident_spec((n_hid, n_out), single_buffer_weights),   # W2^T
                _resident_spec((1, n_out), single_buffer_weights),       # b2
            ],
            out_specs=pl.BlockSpec((batch_tile, n_out), lambda i: (i, 0)),
        ),
        compiler_params=pltpu.CompilerParams(
            dimension_semantics=("parallel",),
            vmem_limit_bytes=vmem_limit,
        ),
        cost_estimate=cost,
    )(x, w1_t, b1, w2_t, b2)

    if B_pad != B:
        out = out[:B]
    return out


if __name__ == "__main__":
    # Small, deterministic synthetic setup (analogous to nn.Linear shapes):
    n_input, n_hidden, n_output = 16, 32, 8
    batch = 64

    key = jax.random.PRNGKey(0)
    kx, k1, kb1, k2, kb2 = jax.random.split(key, 5)

    x = jax.random.normal(kx, (batch, n_input), dtype=jnp.float32)

    # PyTorch nn.Linear stores weight as (out, in); initialize that way, then
    # transpose and pre-cast the matmul operands to bf16 ONCE at init
    # (hoisted out of the jitted hot path). Biases stay f32.
    def linear_init(kw, kb, fan_in, fan_out):
        bound = 1.0 / jnp.sqrt(fan_in)
        w = jax.random.uniform(kw, (fan_out, fan_in), jnp.float32, -bound, bound)
        b = jax.random.uniform(kb, (fan_out,), jnp.float32, -bound, bound)
        return w, b

    w1, b1 = linear_init(k1, kb1, n_input, n_hidden)    # (n_hidden, n_input), (n_hidden,)
    w2, b2 = linear_init(k2, kb2, n_hidden, n_output)   # (n_output, n_hidden), (n_output,)

    w1_t = w1.T.astype(jnp.bfloat16)        # (n_input, n_hidden)
    w2_t = w2.T.astype(jnp.bfloat16)        # (n_hidden, n_output)
    b1_row = b1.reshape(1, n_hidden)
    b2_row = b2.reshape(1, n_output)

    try:
        out = jax.block_until_ready(
            net_forward(x, w1_t, b1_row, w2_t, b2_row, single_buffer_weights=True))
    except Exception:
        # Fallback if this Pallas build rejects single-buffered resident specs;
        # default double-buffering is equally correct.
        out = jax.block_until_ready(
            net_forward(x, w1_t, b1_row, w2_t, b2_row, single_buffer_weights=False))

    # Pure-JAX f32 reference of the PyTorch forward pass. bf16 MXU operands
    # (f32 accumulate) => compare with a loose tolerance.
    ref = jnp.tanh(x @ w1.T + b1) @ w2.T + b2
    assert out.shape == (batch, n_output)
    assert jnp.allclose(out, ref, atol=5e-2, rtol=5e-2), "mismatch vs reference"

    print("KERNEL_OK")
</pallas_src>

<mosaic_0001>
module attributes {stable_mosaic.version = 11 : i64} {
  func.func @mlp_kernel(%arg0: i32, %arg1: memref<32x16xf32, #tpu.memory_space<vmem>>, %arg2: memref<16x32xbf16, #tpu.memory_space<vmem>>, %arg3: memref<1x32xf32, #tpu.memory_space<vmem>>, %arg4: memref<32x8xbf16, #tpu.memory_space<vmem>>, %arg5: memref<1x8xf32, #tpu.memory_space<vmem>>, %arg6: memref<32x8xf32, #tpu.memory_space<vmem>>) attributes {dimension_semantics = [#tpu.dimension_semantics<parallel>], iteration_bounds = array<i64: 2>, scalar_prefetch = 0 : i64, scratch_operands = 0 : i64, tpu.core_type = #tpu.core_type<tc>, window_params = [{transform_indices = @transform_0, window_bounds = array<i64: 32, 16>}, {pipeline_mode = #tpu.pipeline_mode<synchronous>, transform_indices = @transform_1, window_bounds = array<i64: 16, 32>}, {pipeline_mode = #tpu.pipeline_mode<synchronous>, transform_indices = @transform_2, window_bounds = array<i64: 1, 32>}, {pipeline_mode = #tpu.pipeline_mode<synchronous>, transform_indices = @transform_3, window_bounds = array<i64: 32, 8>}, {pipeline_mode = #tpu.pipeline_mode<synchronous>, transform_indices = @transform_4, window_bounds = array<i64: 1, 8>}, {transform_indices = @transform_5, window_bounds = array<i64: 32, 8>}]} {
    %c0 = arith.constant 0 : index
    %c0_0 = arith.constant 0 : index
    %0 = vector.load %arg1[%c0, %c0_0] : memref<32x16xf32, #tpu.memory_space<vmem>>, vector<32x16xf32>
    %1 = arith.truncf %0 : vector<32x16xf32> to vector<32x16xbf16>
    %c0_1 = arith.constant 0 : index
    %c0_2 = arith.constant 0 : index
    %2 = vector.load %arg2[%c0_1, %c0_2] : memref<16x32xbf16, #tpu.memory_space<vmem>>, vector<16x32xbf16>
    %cst = arith.constant dense<0.000000e+00> : vector<32x32xf32>
    %3 = tpu.matmul %1, %2, %cst {dimension_numbers = #tpu.dot_dimension_numbers<[1], [0], [0], [1], [0, 0, 1, 1], [], []>} : vector<32x16xbf16>, vector<16x32xbf16>, vector<32x32xf32> -> vector<32x32xf32>
    %c0_3 = arith.constant 0 : index
    %c0_4 = arith.constant 0 : index
    %4 = vector.load %arg3[%c0_3, %c0_4] : memref<1x32xf32, #tpu.memory_space<vmem>>, vector<1x32xf32>
    %5 = vector.broadcast %4 : vector<1x32xf32> to vector<32x32xf32>
    %6 = arith.addf %3, %5 : vector<32x32xf32>
    %7 = math.tanh %6 : vector<32x32xf32>
    %c0_5 = arith.constant 0 : index
    %c0_6 = arith.constant 0 : index
    %8 = vector.load %arg4[%c0_5, %c0_6] : memref<32x8xbf16, #tpu.memory_space<vmem>>, vector<32x8xbf16>
    %9 = arith.truncf %7 : vector<32x32xf32> to vector<32x32xbf16>
    %cst_7 = arith.constant dense<0.000000e+00> : vector<32x8xf32>
    %10 = tpu.matmul %9, %8, %cst_7 {dimension_numbers = #tpu.dot_dimension_numbers<[1], [0], [0], [1], [0, 0, 1, 1], [], []>} : vector<32x32xbf16>, vector<32x8xbf16>, vector<32x8xf32> -> vector<32x8xf32>
    %c0_8 = arith.constant 0 : index
    %c0_9 = arith.constant 0 : index
    %11 = vector.load %arg5[%c0_8, %c0_9] : memref<1x8xf32, #tpu.memory_space<vmem>>, vector<1x8xf32>
    %12 = vector.broadcast %11 : vector<1x8xf32> to vector<32x8xf32>
    %13 = arith.addf %10, %12 : vector<32x8xf32>
    %c0_10 = arith.constant 0 : index
    %c0_11 = arith.constant 0 : index
    %14 = vector.load %arg6[%c0_10, %c0_11] : memref<32x8xf32, #tpu.memory_space<vmem>>, vector<32x8xf32>
    tpu.vector_store %arg6[%c0_10, %c0_11], %13 {strides = array<i32>} : memref<32x8xf32, #tpu.memory_space<vmem>>, vector<32x8xf32>,
    return
  }
  func.func @transform_0(%arg0: i32) -> (i32, i32) {
    %c0_i32 = arith.constant 0 : i32
    %c0_i32_0 = arith.constant 0 : i32
    return %arg0, %c0_i32 : i32, i32
  }
  func.func @transform_1(%arg0: i32) -> (i32, i32) {
    %c0_i32 = arith.constant 0 : i32
    %c0_i32_0 = arith.constant 0 : i32
    %c0_i32_1 = arith.constant 0 : i32
    return %c0_i32, %c0_i32_0 : i32, i32
  }
  func.func @transform_2(%arg0: i32) -> (i32, i32) {
    %c0_i32 = arith.constant 0 : i32
    %c0_i32_0 = arith.constant 0 : i32
    %c0_i32_1 = arith.constant 0 : i32
    return %c0_i32, %c0_i32_0 : i32, i32
  }
  func.func @transform_3(%arg0: i32) -> (i32, i32) {
    %c0_i32 = arith.constant 0 : i32
    %c0_i32_0 = arith.constant 0 : i32
    %c0_i32_1 = arith.constant 0 : i32
    return %c0_i32, %c0_i32_0 : i32, i32
  }
  func.func @transform_4(%arg0: i32) -> (i32, i32) {
    %c0_i32 = arith.constant 0 : i32
    %c0_i32_0 = arith.constant 0 : i32
    %c0_i32_1 = arith.constant 0 : i32
    return %c0_i32, %c0_i32_0 : i32, i32
  }
  func.func @transform_5(%arg0: i32) -> (i32, i32) {
    %c0_i32 = arith.constant 0 : i32
    %c0_i32_0 = arith.constant 0 : i32
    return %arg0, %c0_i32 : i32, i32
  }
}

module attributes {stable_mosaic.version = 11 : i64} {
  func.func @mlp_kernel(%arg0: i32, %arg1: memref<32x16xf32, #tpu.memory_space<vmem>>, %arg2: memref<16x32xbf16, #tpu.memory_space<vmem>>, %arg3: memref<1x32xf32, #tpu.memory_space<vmem>>, %arg4: memref<32x8xbf16, #tpu.memory_space<vmem>>, %arg5: memref<1x8xf32, #tpu.memory_space<vmem>>, %arg6: memref<32x8xf32, #tpu.memory_space<vmem>>) attributes {dimension_semantics = [#tpu.dimension_semantics<parallel>], iteration_bounds = array<i64: 2>, scalar_prefetch = 0 : i64, scratch_operands = 0 : i64, tpu.core_type = #tpu.core_type<tc>, window_params = [{transform_indices = @transform_0, window_bounds = array<i64: 32, 16>}, {pipeline_mode = #tpu.pipeline_mode<synchronous>, transform_indices = @transform_1, window_bounds = array<i64: 16, 32>}, {pipeline_mode = #tpu.pipeline_mode<synchronous>, transform_indices = @transform_2, window_bounds = array<i64: 1, 32>}, {pipeline_mode = #tpu.pipeline_mode<synchronous>, transform_indices = @transform_3, window_bounds = array<i64: 32, 8>}, {pipeline_mode = #tpu.pipeline_mode<synchronous>, transform_indices = @transform_4, window_bounds = array<i64: 1, 8>}, {transform_indices = @transform_5, window_bounds = array<i64: 32, 8>}]} {
    %c0 = arith.constant 0 : index
    %c0_0 = arith.constant 0 : index
    %0 = vector.load %arg1[%c0, %c0_0] : memref<32x16xf32, #tpu.memory_space<vmem>>, vector<32x16xf32>
    %1 = arith.truncf %0 : vector<32x16xf32> to vector<32x16xbf16>
    %c0_1 = arith.constant 0 : index
    %c0_2 = arith.constant 0 : index
    %2 = vector.load %arg2[%c0_1, %c0_2] : memref<16x32xbf16, #tpu.memory_space<vmem>>, vector<16x32xbf16>
    %cst = arith.constant dense<0.000000e+00> : vector<32x32xf32>
    %3 = tpu.matmul %1, %2, %cst {dimension_numbers = #tpu.dot_dimension_numbers<[1], [0], [0], [1], [0, 0, 1, 1], [], []>} : vector<32x16xbf16>, vector<16x32xbf16>, vector<32x32xf32> -> vector<32x32xf32>
    %c0_3 = arith.constant 0 : index
    %c0_4 = arith.constant 0 : index
    %4 = vector.load %arg3[%c0_3, %c0_4] : memref<1x32xf32, #tpu.memory_space<vmem>>, vector<1x32xf32>
    %5 = vector.broadcast %4 : vector<1x32xf32> to vector<32x32xf32>
    %6 = arith.addf %3, %5 : vector<32x32xf32>
    %7 = math.tanh %6 : vector<32x32xf32>
    %c0_5 = arith.constant 0 : index
    %c0_6 = arith.constant 0 : index
    %8 = vector.load %arg4[%c0_5, %c0_6] : memref<32x8xbf16, #tpu.memory_space<vmem>>, vector<32x8xbf16>
    %9 = arith.truncf %7 : vector<32x32xf32> to vector<32x32xbf16>
    %cst_7 = arith.constant dense<0.000000e+00> : vector<32x8xf32>
    %10 = tpu.matmul %9, %8, %cst_7 {dimension_numbers = #tpu.dot_dimension_numbers<[1], [0], [0], [1], [0, 0, 1, 1], [], []>} : vector<32x32xbf16>, vector<32x8xbf16>, vector<32x8xf32> -> vector<32x8xf32>
    %c0_8 = arith.constant 0 : index
    %c0_9 = arith.constant 0 : index
    %11 = vector.load %arg5[%c0_8, %c0_9] : memref<1x8xf32, #tpu.memory_space<vmem>>, vector<1x8xf32>
    %12 = vector.broadcast %11 : vector<1x8xf32> to vector<32x8xf32>
    %13 = arith.addf %10, %12 : vector<32x8xf32>
    %c0_10 = arith.constant 0 : index
    %c0_11 = arith.constant 0 : index
    %14 = vector.load %arg6[%c0_10, %c0_11] : memref<32x8xf32, #tpu.memory_space<vmem>>, vector<32x8xf32>
    tpu.vector_store %arg6[%c0_10, %c0_11], %13 {strides = array<i32>} : memref<32x8xf32, #tpu.memory_space<vmem>>, vector<32x8xf32>,
    return
  }
  func.func @transform_0(%arg0: i32) -> (i32, i32) {
    %c0_i32 = arith.constant 0 : i32
    %c0_i32_0 = arith.constant 0 : i32
    return %arg0, %c0_i32 : i32, i32
  }
  func.func @transform_1(%arg0: i32) -> (i32, i32) {
    %c0_i32 = arith.constant 0 : i32
    %c0_i32_0 = arith.constant 0 : i32
    %c0_i32_1 = arith.constant 0 : i32
    return %c0_i32, %c0_i32_0 : i32, i32
  }
  func.func @transform_2(%arg0: i32) -> (i32, i32) {
    %c0_i32 = arith.constant 0 : i32
    %c0_i32_0 = arith.constant 0 : i32
    %c0_i32_1 = arith.constant 0 : i32
    return %c0_i32, %c0_i32_0 : i32, i32
  }
  func.func @transform_3(%arg0: i32) -> (i32, i32) {
    %c0_i32 = arith.constant 0 : i32
    %c0_i32_0 = arith.constant 0 : i32
    %c0_i32_1 = arith.constant 0 : i32
    return %c0_i32, %c0_i32_0 : i32, i32
  }
  func.func @transform_4(%arg0: i32) -> (i32, i32) {
    %c0_i32 = arith.constant 0 : i32
    %c0_i32_0 = arith.constant 0 : i32
    %c0_i32_1 = arith.constant 0 : i32
    return %c0_i32, %c0_i32_0 : i32, i32
  }
  func.func @transform_5(%arg0: i32) -> (i32, i32) {
    %c0_i32 = arith.constant 0 : i32
    %c0_i32_0 = arith.constant 0 : i32
    return %arg0, %c0_i32 : i32, i32
  }
}

</mosaic_0001>

<bundles_post_ra>
// kernel: net_forward.1
= control target key start
LH: loop header
LB: loop body
LE: loop exit
PB: predicated region body
PF: predicated region fallthrough
CT: control target
= control target key end

     0   :  { %s550_s18 = smov 0   ;;  %s589_s0 = inlined_call_operand.vmem [shape: f32[64,16], index: 0, kind: input, shape index: {}]   ;;  %s590_s1 = inlined_call_operand.vmem [shape: bf16[16,32], index: 1, kind: input, shape index: {}]   ;;  %s591_s2 = inlined_call_operand.vmem [shape: f32[1,32], index: 2, kind: input, shape index: {}]   ;;  %s592_s3 = inlined_call_operand.vmem [shape: bf16[32,8], index: 3, kind: input, shape index: {}]   ;;  %s593_s4 = inlined_call_operand.vmem [shape: f32[1,8], index: 4, kind: input, shape index: {}]   ;;  %s594_s5 = inlined_call_operand.vmem [shape: f32[64,8], index: 5, kind: output, shape index: {}]  }
   0x1 LB: > { %s452_s19 = sadd.s32 4294967295, %s518_s18   ;;  %p456_p0 = scmp.ge.s32.totalorder %s518_s18, 1  ;;  %s518_s18 = sphi %s550_s18, %s15_s18  }
   0x2   : > { %p188_p1 = scmp.lt.s32.totalorder %s518_s18, 3 }
   0x4   : > { %p189_p2 = pnand %p456_p0, %p188_p1 }
   0x5   : > { %s457_s22 = sshll.u32 (!%p189_p2), %s452_s19, 2 }
   0x6   : > { %192 = sbr.rel (%p189_p2) target bundleno = 438 (0x1b6), region = 40  ;;  %p217_p3 = scmp.lt.s32.totalorder (!%p189_p2), %s457_s22, 7 }
   0xb   : > { %v501_v0 = vld [vmem:[%s590_s1] sm:$0xff]   ;;  %s596_s22 = smov (!%p217_p3, %s457_s22), 7  ;;  %vm250_vm0 = vcmask 130048   ;;  %v502_v7 = vld [vmem:[%s592_s3 + $0x8] sm:$0xff]   ;;  %vm335_vm1 = vcmask 261120   ;;  %vm391_vm2 = vcmask 64512  }
   0xc   : > { %479 = vmatprep.subr.bf16.mxu0 %v501_v0  ;;  %s458_s23 = sshll.u32 %s596_s22, 3  ;;  %v503_v8 = vld [vmem:[%s592_s3] sm:$0xff]   ;;  %485 = vmatprep.subr.bf16.mxu1 %v502_v7 }
   0xd   : > { %480 = vmatpush3.bf16.msra.mxu0 %v501_v0  ;;  %s220_s26 = scalar_lea.vmem %s589_s0, %s458_s23  ;;  %486 = vmatpush3.bf16.msra.mxu1 %v502_v7  ;;  %v461_v10 = vld [vmem:[%s591_s2] ss:$0 sm:$0xff]  ;;  %s226_s10 = scalar_lea.vmem %s594_s5, %s458_s23 }
   0xe   : > { %v229_v1 = vld [vmem:[%s220_s26] sm:$0xff]  ;;  %v230_v2 = vld [vmem:[%s220_s26 + $0x8] sm:$0xff]  ;;  %v231_v3 = vld [vmem:[%s220_s26 + $0x10] sm:$0xff]  ;;  %487 = vmatprep.subr.bf16.mxu1 %v503_v8 }
   0xf   : > { %v233_v4 = vpack.c.bf16 %v230_v2, %v229_v1  ;;  %v232_v5 = vld [vmem:[%s220_s26 + $0x18] sm:$0xff]  ;;  %v465_v25 = vld [vmem:[%s593_s4] ss:$0 sm:$0xff] }
  0x10   : > { %v234_v6 = vpack.c.bf16 %v232_v5, %v231_v3 }
  0x11   : > { %481 = vmatprep.mubr.msk.bf16.mxu0 %vm250_vm0, %v233_v4  ;;  %488 = vmatpush3.bf16.msra.mxu1 %v503_v8 }
  0x12   : > { %482 = vmatmul.mubr.msk.bf16.vlgmr.msra.gmra.mxu0 %vm250_vm0, %v234_v6 }
  0xd2   : > { %v483_v9 = vpop.f32.mrf.mxu0 }
  0xd3   : > { %v300_v15 = vadd.f32 %v483_v9, %v461_v10 }
  0xd4   : > { %v291_v11 = vpop.f32.mrf.mxu0 }
  0xd5   : > { %v292_v12 = vadd.f32 %v461_v10, %v291_v11 }
  0xd6   : > { %v484_v13 = vpop.f32.mrf.mxu0 }
  0xd7   : > { %v303_v14 = vadd.f32 %v484_v13, %v461_v10  ;;  %504 = vtanh.f32 %v292_v12 }
  0xd8   : > { %v294_v16 = vpop.f32.mrf.mxu0 }
  0xd9   : > { %v295_v17 = vadd.f32 %v461_v10, %v294_v16  ;;  %506 = vtanh.f32 %v303_v14 }
  0xdb   : > { %508 = vtanh.f32 %v295_v17 }
  0xdc   : > { %510 = vtanh.f32 %v300_v15 }
  0xe4   : > { %v505_v18 = vpop.eup %504 }
  0xe6   : > { %v507_v19 = vpop.eup %506 }
  0xe8   : > { %v509_v20 = vpop.eup %508 }
  0xe9   : > { %v511_v21 = vpop.eup %510  ;;  %v314_v22 = vpack.c.bf16 %v509_v20, %v505_v18 }
  0xea   : > { %v315_v23 = vpack.c.bf16 %v507_v19, %v511_v21 }
  0xeb   : > { %489 = vmatprep.mubr.msk.bf16.mxu1 %vm335_vm1, %v314_v22 }
  0xec   : > { %490 = vmatmul.mubr.msk.bf16.vlgmr.msra.gmra.mxu1 %vm335_vm1, %v315_v23 }
 0x1ac   : > { %v491_v24 = vpop.f32.mrf.mxu1 }
 0x1ad   : > { %v385_v31 = vadd.f32 %v491_v24, %v465_v25 }
 0x1ae   : > { %v376_v26 = vpop.f32.mrf.mxu1 }
 0x1af   : > { %v377_v27 = vadd.f32 %v465_v25, %v376_v26  ;;  %394 = vst.msk [vmem:[%s226_s10 + $0x10] sm:$0xff] %vm391_vm2, %v385_v31 }
 0x1b0   : > { %v492_v28 = vpop.f32.mrf.mxu1 }
 0x1b1   : > { %392 = vst.msk [vmem:[%s226_s10] sm:$0xff] %vm391_vm2, %v377_v27  ;;  %v388_v32 = vadd.f32 %v492_v28, %v465_v25 }
 0x1b2   : > { %v379_v29 = vpop.f32.mrf.mxu1 }
 0x1b3   : > { %v380_v30 = vadd.f32 %v465_v25, %v379_v29  ;;  %395 = vst.msk [vmem:[%s226_s10 + $0x18] sm:$0xff] %vm391_vm2, %v388_v32 }
 0x1b5   : > { %393 = vst.msk [vmem:[%s226_s10 + $0x8] sm:$0xff] %vm391_vm2, %v380_v30 }
 0x1b6 PF: > { %s15_s18 = sadd.s32 1, %s518_s18  }
 0x1b7   : > { %p12_p4 = scmp.ge.s32.totalorder %s15_s18, 4  }
 0x1b9   :  { %14 = sbr.rel (!%p12_p4) target bundleno = 1 (0x1), region = 70 }

// kernel: net_forward.1
= control target key start
LH: loop header
LB: loop body
LE: loop exit
PB: predicated region body
PF: predicated region fallthrough
CT: control target
= control target key end

     0   :  { %s550_s18 = smov 0   ;;  %s589_s0 = inlined_call_operand.vmem [shape: f32[64,16], index: 0, kind: input, shape index: {}]   ;;  %s590_s1 = inlined_call_operand.vmem [shape: bf16[16,32], index: 1, kind: input, shape index: {}]   ;;  %s591_s2 = inlined_call_operand.vmem [shape: f32[1,32], index: 2, kind: input, shape index: {}]   ;;  %s592_s3 = inlined_call_operand.vmem [shape: bf16[32,8], index: 3, kind: input, shape index: {}]   ;;  %s593_s4 = inlined_call_operand.vmem [shape: f32[1,8], index: 4, kind: input, shape index: {}]   ;;  %s594_s5 = inlined_call_operand.vmem [shape: f32[64,8], index: 5, kind: output, shape index: {}]  }
   0x1 LB: > { %s452_s19 = sadd.s32 4294967295, %s518_s18   ;;  %p456_p0 = scmp.ge.s32.totalorder %s518_s18, 1  ;;  %s518_s18 = sphi %s550_s18, %s15_s18  }
   0x2   : > { %p188_p1 = scmp.lt.s32.totalorder %s518_s18, 3 }
   0x4   : > { %p189_p2 = pnand %p456_p0, %p188_p1 }
   0x5   : > { %s457_s22 = sshll.u32 (!%p189_p2), %s452_s19, 2 }
   0x6   : > { %192 = sbr.rel (%p189_p2) target bundleno = 438 (0x1b6), region = 40  ;;  %p217_p3 = scmp.lt.s32.totalorder (!%p189_p2), %s457_s22, 7 }
   0xb   : > { %v501_v0 = vld [vmem:[%s590_s1] sm:$0xff]   ;;  %s596_s22 = smov (!%p217_p3, %s457_s22), 7  ;;  %vm250_vm0 = vcmask 130048   ;;  %v502_v7 = vld [vmem:[%s592_s3 + $0x8] sm:$0xff]   ;;  %vm335_vm1 = vcmask 261120   ;;  %vm391_vm2 = vcmask 64512  }
   0xc   : > { %479 = vmatprep.subr.bf16.mxu0 %v501_v0  ;;  %s458_s23 = sshll.u32 %s596_s22, 3  ;;  %v503_v8 = vld [vmem:[%s592_s3] sm:$0xff]   ;;  %485 = vmatprep.subr.bf16.mxu1 %v502_v7 }
   0xd   : > { %480 = vmatpush3.bf16.msra.mxu0 %v501_v0  ;;  %s220_s26 = scalar_lea.vmem %s589_s0, %s458_s23  ;;  %486 = vmatpush3.bf16.msra.mxu1 %v502_v7  ;;  %v461_v10 = vld [vmem:[%s591_s2] ss:$0 sm:$0xff]  ;;  %s226_s10 = scalar_lea.vmem %s594_s5, %s458_s23 }
   0xe   : > { %v229_v1 = vld [vmem:[%s220_s26] sm:$0xff]  ;;  %v230_v2 = vld [vmem:[%s220_s26 + $0x8] sm:$0xff]  ;;  %v231_v3 = vld [vmem:[%s220_s26 + $0x10] sm:$0xff]  ;;  %487 = vmatprep.subr.bf16.mxu1 %v503_v8 }
   0xf   : > { %v233_v4 = vpack.c.bf16 %v230_v2, %v229_v1  ;;  %v232_v5 = vld [vmem:[%s220_s26 + $0x18] sm:$0xff]  ;;  %v465_v25 = vld [vmem:[%s593_s4] ss:$0 sm:$0xff] }
  0x10   : > { %v234_v6 = vpack.c.bf16 %v232_v5, %v231_v3 }
  0x11   : > { %481 = vmatprep.mubr.msk.bf16.mxu0 %vm250_vm0, %v233_v4  ;;  %488 = vmatpush3.bf16.msra.mxu1 %v503_v8 }
  0x12   : > { %482 = vmatmul.mubr.msk.bf16.vlgmr.msra.gmra.mxu0 %vm250_vm0, %v234_v6 }
  0xd2   : > { %v483_v9 = vpop.f32.mrf.mxu0 }
  0xd3   : > { %v300_v15 = vadd.f32 %v483_v9, %v461_v10 }
  0xd4   : > { %v291_v11 = vpop.f32.mrf.mxu0 }
  0xd5   : > { %v292_v12 = vadd.f32 %v461_v10, %v291_v11 }
  0xd6   : > { %v484_v13 = vpop.f32.mrf.mxu0 }
  0xd7   : > { %v303_v14 = vadd.f32 %v484_v13, %v461_v10  ;;  %504 = vtanh.f32 %v292_v12 }
  0xd8   : > { %v294_v16 = vpop.f32.mrf.mxu0 }
  0xd9   : > { %v295_v17 = vadd.f32 %v461_v10, %v294_v16  ;;  %506 = vtanh.f32 %v303_v14 }
  0xdb   : > { %508 = vtanh.f32 %v295_v17 }
  0xdc   : > { %510 = vtanh.f32 %v300_v15 }
  0xe4   : > { %v505_v18 = vpop.eup %504 }
  0xe6   : > { %v507_v19 = vpop.eup %506 }
  0xe8   : > { %v509_v20 = vpop.eup %508 }
  0xe9   : > { %v511_v21 = vpop.eup %510  ;;  %v314_v22 = vpack.c.bf16 %v509_v20, %v505_v18 }
  0xea   : > { %v315_v23 = vpack.c.bf16 %v507_v19, %v511_v21 }
  0xeb   : > { %489 = vmatprep.mubr.msk.bf16.mxu1 %vm335_vm1, %v314_v22 }
  0xec   : > { %490 = vmatmul.mubr.msk.bf16.vlgmr.msra.gmra.mxu1 %vm335_vm1, %v315_v23 }
 0x1ac   : > { %v491_v24 = vpop.f32.mrf.mxu1 }
 0x1ad   : > { %v385_v31 = vadd.f32 %v491_v24, %v465_v25 }
 0x1ae   : > { %v376_v26 = vpop.f32.mrf.mxu1 }
 0x1af   : > { %v377_v27 = vadd.f32 %v465_v25, %v376_v26  ;;  %394 = vst.msk [vmem:[%s226_s10 + $0x10] sm:$0xff] %vm391_vm2, %v385_v31 }
 0x1b0   : > { %v492_v28 = vpop.f32.mrf.mxu1 }
 0x1b1   : > { %392 = vst.msk [vmem:[%s226_s10] sm:$0xff] %vm391_vm2, %v377_v27  ;;  %v388_v32 = vadd.f32 %v492_v28, %v465_v25 }
 0x1b2   : > { %v379_v29 = vpop.f32.mrf.mxu1 }
 0x1b3   : > { %v380_v30 = vadd.f32 %v465_v25, %v379_v29  ;;  %395 = vst.msk [vmem:[%s226_s10 + $0x18] sm:$0xff] %vm391_vm2, %v388_v32 }
 0x1b5   : > { %393 = vst.msk [vmem:[%s226_s10 + $0x8] sm:$0xff] %vm391_vm2, %v380_v30 }
 0x1b6 PF: > { %s15_s18 = sadd.s32 1, %s518_s18  }
 0x1b7   : > { %p12_p4 = scmp.ge.s32.totalorder %s15_s18, 4  }
 0x1b9   :  { %14 = sbr.rel (!%p12_p4) target bundleno = 1 (0x1), region = 70 }

</bundles_post_ra>
